<compile_context>
chip_gen: v7x
topology: tpu7x:2x2x1
jax: 0.10.0
libtpu: 0.0.40
codegen_flags: <defaults>
</compile_context>

<pallas_src>
import jax
import jax.numpy as jnp
from jax.experimental import pallas as pl


_LOGIT_PAD = 128  # lane-dense classifier output width (2 real logits, rest zeros)


# ----------------------------------------------------------------------------
# Fused kernel: L x GateGraphConv  +  Linear(F,F) -> PReLU(F) -> Linear(F,2pad)
#   per layer:
#     agg  = A_blockdiag @ x                        (MeanAggregator, 1 dot/layer)
#     xw   = x @ [W_x | Gw_x]                       (fused shared-LHS dot)
#     u    = xw[:, :F] + agg @ W_agg + b
#     g    = sigmoid(u @ Gw_u + xw[:, F:] + gb)
#     x    = relu(g * tanh(u) + (1 - g) * x)
# MXU operands bf16, f32 accumulate; elementwise math f32; x stays resident.
# ----------------------------------------------------------------------------
def _gcn_fused_kernel(x_ref, abd_ref, wxg_ref, wa_ref, wb_ref, gu_ref, gb_ref,
                      w1_ref, b1_ref, alpha_ref, w2_ref, b2_ref, o_ref):
    xf = x_ref[...]                                # (BN, D) f32, resident across layers
    a_bd = abd_ref[...]                            # (BN, BN) bf16 block-diagonal adjacency
    n_layers = wxg_ref.shape[0]
    F = gu_ref.shape[-1]

    for l in range(n_layers):                      # static unroll: L is small
        x_bf = xf.astype(jnp.bfloat16)             # bf16 only at the dot boundary

        # --- MeanAggregator for the whole batch in one dot --------------------
        aggf = jnp.dot(a_bd, x_bf, preferred_element_type=jnp.float32)   # (BN, D) f32

        # --- fused x @ [W_x | Gw_x]  (one dot, split lanes statically) --------
        xw = jnp.dot(x_bf, wxg_ref[l], preferred_element_type=jnp.float32)  # (BN, 2F)

        # --- u = x@W_x + agg@W_agg + b ----------------------------------------
        u = (xw[:, :F]
             + jnp.dot(aggf.astype(jnp.bfloat16), wa_ref[l],
                       preferred_element_type=jnp.float32)
             + wb_ref[l])                                                 # (BN, F)

        # --- gate = sigmoid(u@Gw_u + x@Gw_x + gb) ------------------------------
        gate = jax.nn.sigmoid(
            jnp.dot(u.astype(jnp.bfloat16), gu_ref[l],
                    preferred_element_type=jnp.float32)
            + xw[:, F:] + gb_ref[l])                                      # (BN, F)

        # --- gated residual + relu (all f32 elementwise) -----------------------
        xf = jnp.maximum(gate * jnp.tanh(u) + (1.0 - gate) * xf, 0.0)

    # --- classifier epilogue: Linear -> PReLU -> Linear (padded to 128 lanes) --
    h = jnp.dot(xf.astype(jnp.bfloat16), w1_ref[...],
                preferred_element_type=jnp.float32) + b1_ref[...]
    h = jnp.where(h > 0, h, alpha_ref[...] * h)                           # PReLU
    pred = jnp.dot(h.astype(jnp.bfloat16), w2_ref[...],
                   preferred_element_type=jnp.float32) + b2_ref[...]
    o_ref[...] = pred.astype(o_ref.dtype)                                 # (BN, 128)


def gcn_forward(params, x, A):
    B, N, D = x.shape
    convs = params["convs"]

    # Pre-split conv weights (all layers share D == F; see init_params).
    wx = jnp.stack([c[0][:D] for c in convs])                   # (L, D, F)
    wa = jnp.stack([c[0][D:] for c in convs])                   # (L, D, F)
    wb = jnp.stack([c[1].reshape(1, -1) for c in convs])        # (L, 1, F) f32
    F_ = wx.shape[-1]
    gu = jnp.stack([c[2][:F_] for c in convs])                  # (L, F, F)
    gx = jnp.stack([c[2][F_:] for c in convs])                  # (L, D, F)
    gb = jnp.stack([c[3].reshape(1, -1) for c in convs])        # (L, 1, F) f32

    # Fuse the two weights that multiply x (shared LHS) -> one dot per layer.
    wxg = jnp.concatenate([wx, gx], axis=-1)                    # (L, D, 2F)

    # bf16 MXU operands; biases / PReLU alpha stay f32 (elementwise path).
    wxg = wxg.astype(jnp.bfloat16)
    wa = wa.astype(jnp.bfloat16)
    gu = gu.astype(jnp.bfloat16)

    w1 = params["w1"].astype(jnp.bfloat16)                      # (F, F) bf16
    b1 = params["b1"].reshape(1, -1)                            # (1, F) f32
    alpha = params["alpha"].reshape(1, -1)                      # (1, F) f32
    # Zero-pad the 2-wide classifier head to 128 lanes for unmasked stores.
    w2p = (jnp.zeros((F_, _LOGIT_PAD), jnp.float32)
           .at[:, :2].set(params["w2"]).astype(jnp.bfloat16))   # (F, 128) bf16
    b2p = jnp.zeros((1, _LOGIT_PAD), jnp.float32).at[:, :2].set(
        params["b2"].reshape(1, -1))                            # (1, 128) f32

    BN = B * N
    x_flat = x.reshape(BN, D)

    # Block-diagonal adjacency: one (BN, BN) @ (BN, D) dot replaces the B-way
    # per-batch loop + concatenate inside the kernel.
    a_bd = jnp.zeros((BN, BN), jnp.float32)
    for b in range(B):
        a_bd = a_bd.at[b * N:(b + 1) * N, b * N:(b + 1) * N].set(A[b])
    a_bd = a_bd.astype(jnp.bfloat16)

    # No grid / no BlockSpecs: single invocation, every operand placed whole in
    # VMEM once (single-buffered) — removes the degenerate double-buffered
    # pipeline bookkeeping of a 1-step grid.
    out = pl.pallas_call(
        _gcn_fused_kernel,
        out_shape=jax.ShapeDtypeStruct((BN, _LOGIT_PAD), jnp.float32),
    )(x_flat, a_bd, wxg, wa, wb, gu, gb, w1, b1, alpha, w2p, b2p)

    return out[:, :2]                                           # real logits


# ----------------------------------------------------------------------------
# Parameter init (deterministic, mirrors the PyTorch __init__ shapes)
# ----------------------------------------------------------------------------
def init_params(key, dims):
    # The gated residual `g*tanh(u) + (1-g)*x` requires in_dim == out_dim for
    # every layer (same constraint as the PyTorch module's broadcast).
    assert all(d == dims[0] for d in dims), "gcn requires equal dims per layer"

    params = {"convs": []}
    for i in range(len(dims) - 1):
        in_d, out_d = dims[i], dims[i + 1]
        key, k1, k2, k3 = jax.random.split(key, 4)
        # xavier_uniform_ on (2*in_d, out_d)
        bound = (6.0 / (2 * in_d + out_d)) ** 0.5
        w = jax.random.uniform(k1, (2 * in_d, out_d), jnp.float32, -bound, bound)
        b = jnp.zeros((out_d,), jnp.float32)
        # update_gate = nn.Linear(in_d + out_d, out_d); stored as W^T (in+out, out)
        gbound = 1.0 / ((in_d + out_d) ** 0.5)
        gw = jax.random.uniform(k2, (out_d + in_d, out_d), jnp.float32, -gbound, gbound)
        gb = jax.random.uniform(k3, (out_d,), jnp.float32, -gbound, gbound)
        params["convs"].append((w, b, gw, gb))

    f = dims[-1]
    key, k1, k2, k3, k4 = jax.random.split(key, 5)
    lb = 1.0 / (f ** 0.5)
    params["w1"] = jax.random.uniform(k1, (f, f), jnp.float32, -lb, lb)     # W^T
    params["b1"] = jax.random.uniform(k2, (f,), jnp.float32, -lb, lb)
    params["alpha"] = jnp.full((f,), 0.25, jnp.float32)                     # PReLU init
    params["w2"] = jax.random.uniform(k3, (f, 2), jnp.float32, -lb, lb)     # W^T
    params["b2"] = jax.random.uniform(k4, (2,), jnp.float32, -lb, lb)
    return params


# ----------------------------------------------------------------------------
# Pure-JAX f32 reference (mirrors the PyTorch forward) for a sanity check
# ----------------------------------------------------------------------------
def gcn_reference(params, x, A):
    for (w, b, gw, gb) in params["convs"]:
        agg = jnp.einsum("bij,bjd->bid", A, x)
        cat = jnp.concatenate([x, agg], axis=2)
        u = jnp.einsum("bnd,df->bnf", cat, w) + b
        gate_in = jnp.concatenate([u, x], axis=2)
        uw = jax.nn.sigmoid(jnp.einsum("bnd,df->bnf", gate_in, gw) + gb)
        x = jax.nn.relu(uw * jnp.tanh(u) + (1.0 - uw) * x)
    B, N, F_ = x.shape
    h = x.reshape(B * N, F_) @ params["w1"] + params["b1"]
    h = jnp.where(h > 0, h, params["alpha"] * h)
    return h @ params["w2"] + params["b2"]


if __name__ == "__main__":
    key = jax.random.PRNGKey(0)
    B, N = 2, 8
    dims = [32, 32, 32]   # in_dim must equal out_dim for the gated residual

    key, kx, ka, kp = jax.random.split(key, 4)
    x = jax.random.normal(kx, (B, N, dims[0]), jnp.float32)
    A_raw = jax.random.uniform(ka, (B, N, N), jnp.float32)
    A = A_raw / jnp.sum(A_raw, axis=-1, keepdims=True)   # row-normalized adjacency

    params = init_params(kp, dims)

    pred = jax.block_until_ready(gcn_forward(params, x, A))
    ref = gcn_reference(params, x, A)

    assert pred.shape == (B * N, 2)
    # bf16 MXU operands (f32 accumulation) vs. the pure-f32 reference: the
    # ~2^-9 input rounding makes 1e-4 impossible by construction; 5e-2 covers
    # the worst-case drift over 2 layers + classifier with large margin.
    assert jnp.allclose(pred, ref, atol=5e-2, rtol=5e-2), "mismatch vs reference"
    print("KERNEL_OK")
</pallas_src>

<mosaic_0001>
module attributes {stable_mosaic.version = 11 : i64} {
  func.func @_gcn_fused_kernel(%arg0: memref<16x32xf32, #tpu.memory_space<vmem>>, %arg1: memref<16x16xbf16, #tpu.memory_space<vmem>>, %arg2: memref<2x32x64xbf16, #tpu.memory_space<vmem>>, %arg3: memref<2x32x32xbf16, #tpu.memory_space<vmem>>, %arg4: memref<2x1x32xf32, #tpu.memory_space<vmem>>, %arg5: memref<2x32x32xbf16, #tpu.memory_space<vmem>>, %arg6: memref<2x1x32xf32, #tpu.memory_space<vmem>>, %arg7: memref<32x32xbf16, #tpu.memory_space<vmem>>, %arg8: memref<1x32xf32, #tpu.memory_space<vmem>>, %arg9: memref<1x32xf32, #tpu.memory_space<vmem>>, %arg10: memref<32x128xbf16, #tpu.memory_space<vmem>>, %arg11: memref<1x128xf32, #tpu.memory_space<vmem>>, %arg12: memref<16x128xf32, #tpu.memory_space<vmem>>) attributes {dimension_semantics = [], scalar_prefetch = 0 : i64, scratch_operands = 0 : i64, tpu.core_type = #tpu.core_type<tc>} {
    %c0 = arith.constant 0 : index
    %c0_0 = arith.constant 0 : index
    %0 = vector.load %arg0[%c0, %c0_0] : memref<16x32xf32, #tpu.memory_space<vmem>>, vector<16x32xf32>
    %c0_1 = arith.constant 0 : index
    %c0_2 = arith.constant 0 : index
    %1 = vector.load %arg1[%c0_1, %c0_2] : memref<16x16xbf16, #tpu.memory_space<vmem>>, vector<16x16xbf16>
    %2 = arith.truncf %0 : vector<16x32xf32> to vector<16x32xbf16>
    %cst = arith.constant dense<0.000000e+00> : vector<16x32xf32>
    %3 = tpu.matmul %1, %2, %cst {dimension_numbers = #tpu.dot_dimension_numbers<[1], [0], [0], [1], [0, 0, 1, 1], [], []>} : vector<16x16xbf16>, vector<16x32xbf16>, vector<16x32xf32> -> vector<16x32xf32>
    %c0_3 = arith.constant 0 : index
    %c0_4 = arith.constant 0 : index
    %c0_5 = arith.constant 0 : index
    %4 = vector.load %arg2[%c0_3, %c0_4, %c0_5] : memref<2x32x64xbf16, #tpu.memory_space<vmem>>, vector<1x32x64xbf16>
    %5 = vector.shape_cast %4 : vector<1x32x64xbf16> to vector<32x64xbf16>
    %cst_6 = arith.constant dense<0.000000e+00> : vector<16x64xf32>
    %6 = tpu.matmul %2, %5, %cst_6 {dimension_numbers = #tpu.dot_dimension_numbers<[1], [0], [0], [1], [0, 0, 1, 1], [], []>} : vector<16x32xbf16>, vector<32x64xbf16>, vector<16x64xf32> -> vector<16x64xf32>
    %7 = vector.extract_strided_slice %6 {offsets = [0, 0], sizes = [16, 32], strides = [1, 1]} : vector<16x64xf32> to vector<16x32xf32>
    %8 = arith.truncf %3 : vector<16x32xf32> to vector<16x32xbf16>
    %c0_7 = arith.constant 0 : index
    %c0_8 = arith.constant 0 : index
    %c0_9 = arith.constant 0 : index
    %9 = vector.load %arg3[%c0_7, %c0_8, %c0_9] : memref<2x32x32xbf16, #tpu.memory_space<vmem>>, vector<1x32x32xbf16>
    %10 = vector.shape_cast %9 : vector<1x32x32xbf16> to vector<32x32xbf16>
    %cst_10 = arith.constant dense<0.000000e+00> : vector<16x32xf32>
    %11 = tpu.matmul %8, %10, %cst_10 {dimension_numbers = #tpu.dot_dimension_numbers<[1], [0], [0], [1], [0, 0, 1, 1], [], []>} : vector<16x32xbf16>, vector<32x32xbf16>, vector<16x32xf32> -> vector<16x32xf32>
    %12 = arith.addf %7, %11 : vector<16x32xf32>
    %c0_11 = arith.constant 0 : index
    %c0_12 = arith.constant 0 : index
    %c0_13 = arith.constant 0 : index
    %13 = vector.load %arg4[%c0_11, %c0_12, %c0_13] : memref<2x1x32xf32, #tpu.memory_space<vmem>>, vector<1x1x32xf32>
    %14 = vector.shape_cast %13 : vector<1x1x32xf32> to vector<1x32xf32>
    %15 = vector.broadcast %14 : vector<1x32xf32> to vector<16x32xf32>
    %16 = arith.addf %12, %15 : vector<16x32xf32>
    %17 = arith.truncf %16 : vector<16x32xf32> to vector<16x32xbf16>
    %c0_14 = arith.constant 0 : index
    %c0_15 = arith.constant 0 : index
    %c0_16 = arith.constant 0 : index
    %18 = vector.load %arg5[%c0_14, %c0_15, %c0_16] : memref<2x32x32xbf16, #tpu.memory_space<vmem>>, vector<1x32x32xbf16>
    %19 = vector.shape_cast %18 : vector<1x32x32xbf16> to vector<32x32xbf16>
    %cst_17 = arith.constant dense<0.000000e+00> : vector<16x32xf32>
    %20 = tpu.matmul %17, %19, %cst_17 {dimension_numbers = #tpu.dot_dimension_numbers<[1], [0], [0], [1], [0, 0, 1, 1], [], []>} : vector<16x32xbf16>, vector<32x32xbf16>, vector<16x32xf32> -> vector<16x32xf32>
    %21 = vector.extract_strided_slice %6 {offsets = [0, 32], sizes = [16, 32], strides = [1, 1]} : vector<16x64xf32> to vector<16x32xf32>
    %22 = arith.addf %20, %21 : vector<16x32xf32>
    %c0_18 = arith.constant 0 : index
    %c0_19 = arith.constant 0 : index
    %c0_20 = arith.constant 0 : index
    %23 = vector.load %arg6[%c0_18, %c0_19, %c0_20] : memref<2x1x32xf32, #tpu.memory_space<vmem>>, vector<1x1x32xf32>
    %24 = vector.shape_cast %23 : vector<1x1x32xf32> to vector<1x32xf32>
    %25 = vector.broadcast %24 : vector<1x32xf32> to vector<16x32xf32>
    %26 = arith.addf %22, %25 : vector<16x32xf32>
    %27 = arith.negf %26 : vector<16x32xf32>
    %28 = math.exp %27 : vector<16x32xf32>
    %cst_21 = arith.constant 1.000000e+00 : f32
    %29 = vector.broadcast %cst_21 : f32 to vector<16x32xf32>
    %30 = arith.addf %29, %28 : vector<16x32xf32>
    %31 = arith.divf %29, %30 : vector<16x32xf32>
    %32 = math.tanh %16 : vector<16x32xf32>
    %33 = arith.mulf %31, %32 : vector<16x32xf32>
    %cst_22 = arith.constant 1.000000e+00 : f32
    %34 = vector.broadcast %cst_22 : f32 to vector<16x32xf32>
    %35 = arith.subf %34, %31 : vector<16x32xf32>
    %36 = arith.mulf %35, %0 : vector<16x32xf32>
    %37 = arith.addf %33, %36 : vector<16x32xf32>
    %cst_23 = arith.constant 0.000000e+00 : f32
    %38 = vector.broadcast %cst_23 : f32 to vector<16x32xf32>
    %39 = arith.maximumf %37, %38 : vector<16x32xf32>
    %40 = arith.truncf %39 : vector<16x32xf32> to vector<16x32xbf16>
    %cst_24 = arith.constant dense<0.000000e+00> : vector<16x32xf32>
    %41 = tpu.matmul %1, %40, %cst_24 {dimension_numbers = #tpu.dot_dimension_numbers<[1], [0], [0], [1], [0, 0, 1, 1], [], []>} : vector<16x16xbf16>, vector<16x32xbf16>, vector<16x32xf32> -> vector<16x32xf32>
    %c1 = arith.constant 1 : index
    %c0_25 = arith.constant 0 : index
    %c0_26 = arith.constant 0 : index
    %42 = vector.load %arg2[%c1, %c0_25, %c0_26] : memref<2x32x64xbf16, #tpu.memory_space<vmem>>, vector<1x32x64xbf16>
    %43 = vector.shape_cast %42 : vector<1x32x64xbf16> to vector<32x64xbf16>
    %cst_27 = arith.constant dense<0.000000e+00> : vector<16x64xf32>
    %44 = tpu.matmul %40, %43, %cst_27 {dimension_numbers = #tpu.dot_dimension_numbers<[1], [0], [0], [1], [0, 0, 1, 1], [], []>} : vector<16x32xbf16>, vector<32x64xbf16>, vector<16x64xf32> -> vector<16x64xf32>
    %45 = vector.extract_strided_slice %44 {offsets = [0, 0], sizes = [16, 32], strides = [1, 1]} : vector<16x64xf32> to vector<16x32xf32>
    %46 = arith.truncf %41 : vector<16x32xf32> to vector<16x32xbf16>
    %c1_28 = arith.constant 1 : index
    %c0_29 = arith.constant 0 : index
    %c0_30 = arith.constant 0 : index
    %47 = vector.load %arg3[%c1_28, %c0_29, %c0_30] : memref<2x32x32xbf16, #tpu.memory_space<vmem>>, vector<1x32x32xbf16>
    %48 = vector.shape_cast %47 : vector<1x32x32xbf16> to vector<32x32xbf16>
    %cst_31 = arith.constant dense<0.000000e+00> : vector<16x32xf32>
    %49 = tpu.matmul %46, %48, %cst_31 {dimension_numbers = #tpu.dot_dimension_numbers<[1], [0], [0], [1], [0, 0, 1, 1], [], []>} : vector<16x32xbf16>, vector<32x32xbf16>, vector<16x32xf32> -> vector<16x32xf32>
    %50 = arith.addf %45, %49 : vector<16x32xf32>
    %c1_32 = arith.constant 1 : index
    %c0_33 = arith.constant 0 : index
    %c0_34 = arith.constant 0 : index
    %51 = vector.load %arg4[%c1_32, %c0_33, %c0_34] : memref<2x1x32xf32, #tpu.memory_space<vmem>>, vector<1x1x32xf32>
    %52 = vector.shape_cast %51 : vector<1x1x32xf32> to vector<1x32xf32>
    %53 = vector.broadcast %52 : vector<1x32xf32> to vector<16x32xf32>
    %54 = arith.addf %50, %53 : vector<16x32xf32>
    %55 = arith.truncf %54 : vector<16x32xf32> to vector<16x32xbf16>
    %c1_35 = arith.constant 1 : index
    %c0_36 = arith.constant 0 : index
    %c0_37 = arith.constant 0 : index
    %56 = vector.load %arg5[%c1_35, %c0_36, %c0_37] : memref<2x32x32xbf16, #tpu.memory_space<vmem>>, vector<1x32x32xbf16>
    %57 = vector.shape_cast %56 : vector<1x32x32xbf16> to vector<32x32xbf16>
    %cst_38 = arith.constant dense<0.000000e+00> : vector<16x32xf32>
    %58 = tpu.matmul %55, %57, %cst_38 {dimension_numbers = #tpu.dot_dimension_numbers<[1], [0], [0], [1], [0, 0, 1, 1], [], []>} : vector<16x32xbf16>, vector<32x32xbf16>, vector<16x32xf32> -> vector<16x32xf32>
    %59 = vector.extract_strided_slice %44 {offsets = [0, 32], sizes = [16, 32], strides = [1, 1]} : vector<16x64xf32> to vector<16x32xf32>
    %60 = arith.addf %58, %59 : vector<16x32xf32>
    %c1_39 = arith.constant 1 : index
    %c0_40 = arith.constant 0 : index
    %c0_41 = arith.constant 0 : index
    %61 = vector.load %arg6[%c1_39, %c0_40, %c0_41] : memref<2x1x32xf32, #tpu.memory_space<vmem>>, vector<1x1x32xf32>
    %62 = vector.shape_cast %61 : vector<1x1x32xf32> to vector<1x32xf32>
    %63 = vector.broadcast %62 : vector<1x32xf32> to vector<16x32xf32>
    %64 = arith.addf %60, %63 : vector<16x32xf32>
    %65 = arith.negf %64 : vector<16x32xf32>
    %66 = math.exp %65 : vector<16x32xf32>
    %cst_42 = arith.constant 1.000000e+00 : f32
    %67 = vector.broadcast %cst_42 : f32 to vector<16x32xf32>
    %68 = arith.addf %67, %66 : vector<16x32xf32>
    %69 = arith.divf %67, %68 : vector<16x32xf32>
    %70 = math.tanh %54 : vector<16x32xf32>
    %71 = arith.mulf %69, %70 : vector<16x32xf32>
    %cst_43 = arith.constant 1.000000e+00 : f32
    %72 = vector.broadcast %cst_43 : f32 to vector<16x32xf32>
    %73 = arith.subf %72, %69 : vector<16x32xf32>
    %74 = arith.mulf %73, %39 : vector<16x32xf32>
    %75 = arith.addf %71, %74 : vector<16x32xf32>
    %cst_44 = arith.constant 0.000000e+00 : f32
    %76 = vector.broadcast %cst_44 : f32 to vector<16x32xf32>
    %77 = arith.maximumf %75, %76 : vector<16x32xf32>
    %78 = arith.truncf %77 : vector<16x32xf32> to vector<16x32xbf16>
    %c0_45 = arith.constant 0 : index
    %c0_46 = arith.constant 0 : index
    %79 = vector.load %arg7[%c0_45, %c0_46] : memref<32x32xbf16, #tpu.memory_space<vmem>>, vector<32x32xbf16>
    %cst_47 = arith.constant dense<0.000000e+00> : vector<16x32xf32>
    %80 = tpu.matmul %78, %79, %cst_47 {dimension_numbers = #tpu.dot_dimension_numbers<[1], [0], [0], [1], [0, 0, 1, 1], [], []>} : vector<16x32xbf16>, vector<32x32xbf16>, vector<16x32xf32> -> vector<16x32xf32>
    %c0_48 = arith.constant 0 : index
    %c0_49 = arith.constant 0 : index
    %81 = vector.load %arg8[%c0_48, %c0_49] : memref<1x32xf32, #tpu.memory_space<vmem>>, vector<1x32xf32>
    %82 = vector.broadcast %81 : vector<1x32xf32> to vector<16x32xf32>
    %83 = arith.addf %80, %82 : vector<16x32xf32>
    %cst_50 = arith.constant 0.000000e+00 : f32
    %84 = vector.broadcast %cst_50 : f32 to vector<16x32xf32>
    %85 = arith.cmpf ogt, %83, %84 : vector<16x32xf32>
    %c0_51 = arith.constant 0 : index
    %c0_52 = arith.constant 0 : index
    %86 = vector.load %arg9[%c0_51, %c0_52] : memref<1x32xf32, #tpu.memory_space<vmem>>, vector<1x32xf32>
    %87 = vector.broadcast %86 : vector<1x32xf32> to vector<16x32xf32>
    %88 = arith.mulf %87, %83 : vector<16x32xf32>
    %89 = arith.select %85, %83, %88 : vector<16x32xi1>, vector<16x32xf32>
    %90 = arith.truncf %89 : vector<16x32xf32> to vector<16x32xbf16>
    %c0_53 = arith.constant 0 : index
    %c0_54 = arith.constant 0 : index
    %91 = vector.load %arg10[%c0_53, %c0_54] : memref<32x128xbf16, #tpu.memory_space<vmem>>, vector<32x128xbf16>
    %cst_55 = arith.constant dense<0.000000e+00> : vector<16x128xf32>
    %92 = tpu.matmul %90, %91, %cst_55 {dimension_numbers = #tpu.dot_dimension_numbers<[1], [0], [0], [1], [0, 0, 1, 1], [], []>} : vector<16x32xbf16>, vector<32x128xbf16>, vector<16x128xf32> -> vector<16x128xf32>
    %c0_56 = arith.constant 0 : index
    %c0_57 = arith.constant 0 : index
    %93 = vector.load %arg11[%c0_56, %c0_57] : memref<1x128xf32, #tpu.memory_space<vmem>>, vector<1x128xf32>
    %94 = vector.broadcast %93 : vector<1x128xf32> to vector<16x128xf32>
    %95 = arith.addf %92, %94 : vector<16x128xf32>
    %c0_58 = arith.constant 0 : index
    %c0_59 = arith.constant 0 : index
    %96 = vector.load %arg12[%c0_58, %c0_59] : memref<16x128xf32, #tpu.memory_space<vmem>>, vector<16x128xf32>
    tpu.vector_store %arg12[%c0_58, %c0_59], %95 {strides = array<i32>} : memref<16x128xf32, #tpu.memory_space<vmem>>, vector<16x128xf32>,
    return
  }
}

</mosaic_0001>

<bundles_post_ra>
// kernel: tpu_custom_call.1
= control target key start
LH: loop header
LB: loop body
LE: loop exit
PB: predicated region body
PF: predicated region fallthrough
CT: control target
= control target key end

     0   :  { %17 = vsyncpa [#allocation3], 0  ;;  %s1618_s0 = inlined_call_operand.hbm [shape: f32[16,32], index: 0, kind: input, shape index: {}]   ;;  %s1619_s1 = inlined_call_operand.hbm [shape: bf16[16,16], index: 1, kind: input, shape index: {}]   ;;  %s1620_s2 = inlined_call_operand.hbm [shape: bf16[2,32,64], index: 2, kind: input, shape index: {}]   ;;  %s1621_s3 = inlined_call_operand.hbm [shape: bf16[2,32,32], index: 3, kind: input, shape index: {}]   ;;  %s1622_s4 = inlined_call_operand.vmem [shape: f32[2,1,32], index: 4, kind: input, shape index: {}]   ;;  %s1623_s5 = inlined_call_operand.hbm [shape: bf16[2,32,32], index: 5, kind: input, shape index: {}]   ;;  %s1624_s6 = inlined_call_operand.hbm [shape: f32[2,1,32], index: 6, kind: input, shape index: {}]   ;;  %s1625_s7 = inlined_call_operand.vmem [shape: bf16[32,32], index: 7, kind: input, shape index: {}]   ;;  %s1626_s8 = inlined_call_operand.hbm [shape: f32[1,32], index: 8, kind: input, shape index: {}]   ;;  %s1627_s9 = inlined_call_operand.hbm [shape: f32[1,32], index: 9, kind: input, shape index: {}]   ;;  %s1628_s10 = inlined_call_operand.vmem [shape: bf16[32,128], index: 10, kind: input, shape index: {}]   ;;  %s1629_s11 = inlined_call_operand.vmem [shape: f32[1,128], index: 11, kind: input, shape index: {}]   ;;  %s1630_s12 = inlined_call_operand.hbm [shape: f32[16,128], index: 12, kind: output, shape index: {}]  }
   0x1   :  { %18 = vsyncpa [#allocation6], 0 }
   0x2   :  { %19 = vsyncpa [#allocation9], 0 }
   0x3   :  { %20 = vsyncpa [#allocation12], 0 }
   0x4   :  { %21 = vsyncpa [#allocation15], 0 }
   0x5   :  { %22 = vsyncpa [#allocation4], 0  ;;  %s1303_s21 = smov [#allocation5]   ;;  %s1093_s25 = scalar_lea.hbm %s1619_s1, 128 }
   0x6   :  { %s40_s22 = sshll.u32 %s1303_s21, 4  ;;  %p1094_p0 = scmp.ne.s32.totalorder %s1619_s1, %s1093_s25  ;;  %s41_s22 = int_to_ptr.vmem [resolvable:$true] %s40_s22 }
   0x7   :  { %p1097_p1 = scmp.lt.u32.totalorder %s1093_s25, %s1619_s1 }
   0x9   :  { %p1099_p2 = pnand %p1097_p1, %p1094_p0 }
   0xb   :  { %1102 = shalt.err (!%p1099_p2)
}
   0xc   :  { %s1103_s30 = scalar_lea.vmem %s41_s22, 128  ;;  %p1108_p4 = scmp.lt.s32.totalorder %s41_s22, %s41_s22 }
   0xd   :  { %p1104_p3 = scmp.ne.s32.totalorder %s41_s22, %s1103_s30  ;;  %p1109_p5 = scmp.lt.s32.totalorder %s1103_s30, %s1103_s30 }
   0xf   :  { %p1110_p6 = por %p1109_p5, %p1108_p4 }
  0x11   :  { %p1111_p7 = pnand %p1110_p6, %p1104_p3 }
  0x13   :  { %1114 = shalt.err (!%p1111_p7)
}
  0x14   :  { %s1304_s13 = smov 64   ;;  %s1305_s14 = smov 4  }
  0x15   :  { %46 = dma.hbm_to_vmem [thread:$0]  %s1619_s1, 128, %s41_s22, [#allocation6], %s1304_s13, %s1304_s13, %s1305_s14  }
  0x16   :  { %s1306_s17 = smov [#allocation8]   ;;  %s1307_s19 = smov [#allocation11]  }
  0x17   :  { %s64_s18 = sshll.u32 %s1306_s17, 4  ;;  %s90_s20 = sshll.u32 %s1307_s19, 4  ;;  %s65_s18 = int_to_ptr.vmem [resolvable:$true] %s64_s18  ;;  %s91_s20 = int_to_ptr.vmem [resolvable:$true] %s90_s20 }
  0x18   :  { %s1115_s24 = scalar_lea.hbm %s1621_s3, 512 }
  0x19   :  { %p1116_p8 = scmp.ne.s32.totalorder %s1621_s3, %s1115_s24  ;;  %p1119_p9 = scmp.lt.u32.totalorder %s1115_s24, %s1621_s3 }
  0x1b   :  { %p1121_p10 = pnand %p1119_p9, %p1116_p8 }
  0x1d   :  { %1124 = shalt.err (!%p1121_p10)
}
  0x1e   :  { %s1125_s1 = scalar_lea.vmem %s65_s18, 512  ;;  %p1130_p12 = scmp.lt.s32.totalorder %s65_s18, %s65_s18 }
  0x1f   :  { %p1126_p11 = scmp.ne.s32.totalorder %s65_s18, %s1125_s1  ;;  %p1131_p13 = scmp.lt.s32.totalorder %s1125_s1, %s1125_s1 }
  0x21   :  { %p1132_p0 = por %p1131_p13, %p1130_p12 }
  0x23   :  { %p1133_p1 = pnand %p1132_p0, %p1126_p11 }
  0x25   :  { %1136 = shalt.err (!%p1133_p1)
}
  0x26   :  { %70 = dma.hbm_to_vmem [thread:$0]  %s1621_s3, 512, %s65_s18, [#allocation9], %s1304_s13, %s1304_s13, %s1305_s14  }
  0x27   :  { %s1137_s16 = scalar_lea.hbm %s1624_s6, 32 }
  0x28   :  { %p1138_p2 = scmp.ne.s32.totalorder %s1624_s6, %s1137_s16  ;;  %p1141_p3 = scmp.lt.u32.totalorder %s1137_s16, %s1624_s6 }
  0x2a   :  { %p1143_p4 = pnand %p1141_p3, %p1138_p2 }
  0x2c   :  { %1146 = shalt.err (!%p1143_p4)
}
  0x2d   :  { %s1147_s24 = scalar_lea.vmem %s91_s20, 32  ;;  %p1152_p6 = scmp.lt.s32.totalorder %s91_s20, %s91_s20 }
  0x2e   :  { %p1148_p5 = scmp.ne.s32.totalorder %s91_s20, %s1147_s24  ;;  %p1153_p7 = scmp.lt.s32.totalorder %s1147_s24, %s1147_s24 }
  0x30   :  { %p1154_p8 = por %p1153_p7, %p1152_p6 }
  0x32   :  { %p1155_p9 = pnand %p1154_p8, %p1148_p5 }
  0x34   :  { %1158 = shalt.err (!%p1155_p9)
}
  0x35   :  { %s1308_s3 = smov 16   ;;  %s1309_s18 = smov 1  }
  0x36   :  { %96 = dma.hbm_to_vmem [thread:$0]  %s1624_s6, 32, %s91_s20, [#allocation12], %s1308_s3, %s1308_s3, %s1309_s18  }
  0x37   :  { %s1310_s27 = smov [#allocation2]   ;;  %s1159_s29 = scalar_lea.hbm %s1618_s0, 256 }
  0x38   :  { %s28_s28 = sshll.u32 %s1310_s27, 4  ;;  %p1160_p10 = scmp.ne.s32.totalorder %s1618_s0, %s1159_s29  ;;  %s29_s28 = int_to_ptr.vmem [resolvable:$true] %s28_s28 }
  0x39   :  { %p1163_p11 = scmp.lt.u32.totalorder %s1159_s29, %s1618_s0 }
  0x3b   :  { %p1165_p12 = pnand %p1163_p11, %p1160_p10 }
  0x3d   :  { %1168 = shalt.err (!%p1165_p12)
}
  0x3e   :  { %s1169_s19 = scalar_lea.vmem %s29_s28, 256  ;;  %p1174_p0 = scmp.lt.s32.totalorder %s29_s28, %s29_s28 }
  0x3f   :  { %p1170_p13 = scmp.ne.s32.totalorder %s29_s28, %s1169_s19  ;;  %p1175_p1 = scmp.lt.s32.totalorder %s1169_s19, %s1169_s19 }
  0x41   :  { %p1176_p2 = por %p1175_p1, %p1174_p0 }
  0x43   :  { %p1177_p3 = pnand %p1176_p2, %p1170_p13 }
  0x45   :  { %1180 = shalt.err (!%p1177_p3)
}
  0x46   :  { %s1311_s6 = smov 128   ;;  %s1312_s20 = smov 8  }
  0x47   :  { %34 = dma.hbm_to_vmem [thread:$0]  %s1618_s0, 256, %s29_s28, [#allocation3], %s1311_s6, %s1311_s6, %s1312_s20  }
  0x48   :  { %s1313_s24 = smov [#allocation7]   ;;  %s1314_s18 = smov [#allocation10]  }
  0x49   :  { %s52_s3 = sshll.u32 %s1313_s24, 4  ;;  %s78_s25 = sshll.u32 %s1314_s18, 4  ;;  %s53_s3 = int_to_ptr.vmem [resolvable:$true] %s52_s3  ;;  %s1443_s25 = int_to_ptr.vmem [resolvable:$true] %s78_s25 }
  0x4a   :  { %s1181_s1 = scalar_lea.hbm %s1620_s2, 512 }
  0x4b   :  { %p1182_p4 = scmp.ne.s32.totalorder %s1620_s2, %s1181_s1  ;;  %p1185_p5 = scmp.lt.u32.totalorder %s1181_s1, %s1620_s2 }
  0x4d   :  { %p1187_p6 = pnand %p1185_p5, %p1182_p4 }
  0x4f   :  { %1190 = shalt.err (!%p1187_p6)
}
  0x50   :  { %s1191_s0 = scalar_lea.vmem %s53_s3, 512  ;;  %p1196_p8 = scmp.lt.s32.totalorder %s53_s3, %s53_s3 }
  0x51   :  { %p1192_p7 = scmp.ne.s32.totalorder %s53_s3, %s1191_s0  ;;  %p1197_p9 = scmp.lt.s32.totalorder %s1191_s0, %s1191_s0 }
  0x53   :  { %p1198_p10 = por %p1197_p9, %p1196_p8 }
  0x55   :  { %p1199_p11 = pnand %p1198_p10, %p1192_p7 }
  0x57   :  { %1202 = shalt.err (!%p1199_p11)
}
  0x58   :  { %58 = dma.hbm_to_vmem [thread:$0]  %s1620_s2, 512, %s53_s3, [#allocation6], %s1304_s13, %s1304_s13, %s1305_s14  }
  0x59   :  { %s1203_s21 = scalar_lea.hbm %s1623_s5, 512 }
  0x5a   :  { %p1204_p12 = scmp.ne.s32.totalorder %s1623_s5, %s1203_s21  ;;  %p1207_p13 = scmp.lt.u32.totalorder %s1203_s21, %s1623_s5 }
  0x5c   :  { %p1209_p0 = pnand %p1207_p13, %p1204_p12 }
  0x5e   :  { %1212 = shalt.err (!%p1209_p0)
}
  0x5f   :  { %s1213_s27 = scalar_lea.vmem %s1443_s25, 512  ;;  %p1218_p2 = scmp.lt.s32.totalorder %s1443_s25, %s1443_s25 }
  0x60   :  { %p1214_p1 = scmp.ne.s32.totalorder %s1443_s25, %s1213_s27  ;;  %p1219_p3 = scmp.lt.s32.totalorder %s1213_s27, %s1213_s27 }
  0x62   :  { %p1220_p4 = por %p1219_p3, %p1218_p2 }
  0x64   :  { %p1221_p5 = pnand %p1220_p4, %p1214_p1 }
  0x66   :  { %1224 = shalt.err (!%p1221_p5)
}
  0x67   :  { %84 = dma.hbm_to_vmem [thread:$0]  %s1623_s5, 512, %s1443_s25, [#allocation9], %s1304_s13, %s1304_s13, %s1305_s14  }
  0x68   :  { %s1315_s1 = smov [#allocation13]   ;;  %s1316_s29 = smov [#allocation14]  }
  0x69   :  { %s105_s22 = sshll.u32 %s1315_s1, 4  ;;  %s115_s30 = sshll.u32 %s1316_s29, 4  ;;  %s106_s22 = int_to_ptr.vmem [resolvable:$true] %s105_s22  ;;  %s116_s30 = int_to_ptr.vmem [resolvable:$true] %s115_s30 }
  0x6a   :  { %s1225_s28 = scalar_lea.hbm %s1626_s8, 16 }
  0x6b   :  { %p1226_p6 = scmp.ne.s32.totalorder %s1626_s8, %s1225_s28  ;;  %p1229_p7 = scmp.lt.u32.totalorder %s1225_s28, %s1626_s8 }
  0x6d   :  { %p1231_p8 = pnand %p1229_p7, %p1226_p6 }
  0x6f   :  { %1234 = shalt.err (!%p1231_p8)
}
  0x70   :  { %s1235_s5 = scalar_lea.vmem %s106_s22, 16  ;;  %s1239_s13 = scalar_lea.vmem %s106_s22, 32 }
  0x71   :  { %p1236_p9 = scmp.ne.s32.totalorder %s106_s22, %s1235_s5  ;;  %p1240_p10 = scmp.lt.s32.totalorder %s106_s22, %s106_s22 }
  0x72   :  { %p1241_p11 = scmp.lt.s32.totalorder %s1239_s13, %s1235_s5 }
  0x74   :  { %p1242_p12 = por %p1241_p11, %p1240_p10 }
  0x76   :  { %p1243_p13 = pnand %p1242_p12, %p1236_p9 }
  0x78   :  { %1246 = shalt.err (!%p1243_p13)
}
  0x79   :  { %108 = dma.hbm_to_vmem [thread:$0]  %s1626_s8, 16, %s106_s22, [#allocation12]  }
  0x7a   :  { %s1247_s18 = scalar_lea.hbm %s1627_s9, 16 }
  0x7b   :  { %p1248_p0 = scmp.ne.s32.totalorder %s1627_s9, %s1247_s18  ;;  %p1251_p1 = scmp.lt.u32.totalorder %s1247_s18, %s1627_s9 }
  0x7d   :  { %p1253_p2 = pnand %p1251_p1, %p1248_p0 }
  0x7f   :  { %1256 = shalt.err (!%p1253_p2)
}
  0x80   :  { %s1257_s1 = scalar_lea.vmem %s116_s30, 16  ;;  %s1261_s29 = scalar_lea.vmem %s116_s30, 32 }
  0x81   :  { %p1258_p3 = scmp.ne.s32.totalorder %s116_s30, %s1257_s1  ;;  %p1262_p4 = scmp.lt.s32.totalorder %s116_s30, %s116_s30 }
  0x82   :  { %p1263_p5 = scmp.lt.s32.totalorder %s1261_s29, %s1257_s1 }
  0x84   :  { %p1264_p6 = por %p1263_p5, %p1262_p4 }
  0x86   :  { %p1265_p7 = pnand %p1264_p6, %p1258_p3 }
  0x88   :  { %1268 = shalt.err (!%p1265_p7)
}
  0x89   :  { %118 = dma.hbm_to_vmem [thread:$0]  %s1627_s9, 16, %s116_s30, [#allocation15]  }
  0x8a   :  { %1291 = dma.done.wait [#allocation3], 256  }
  0x8b   :  { %1292 = vsyncadd [#allocation3], 4294967040 }
  0x8c   :  { %1293 = dma.done.wait [#allocation6], 640  }
  0x8d   :  { %1294 = vsyncadd [#allocation6], 4294966656 }
  0x8e   :  { %1295 = dma.done.wait [#allocation9], 1024  }
  0x8f   :  { %1296 = vsyncadd [#allocation9], 4294966272 }
  0x90   :  { %1297 = dma.done.wait [#allocation12], 48  }
  0x91   :  { %1298 = vsyncadd [#allocation12], 4294967248 }
  0x92   :  { %1299 = dma.done.wait [#allocation15], 16  }
  0x93   :  { %1300 = vsyncadd [#allocation15], 4294967280  ;;  %v1317_v0 = vmov 0.0   ;;  %vm1318_vm0 = vmmov 0   ;;  %v1510_v1 = vld [vmem:[#allocation2] sm:$0xff]  ;;  %v1512_v2 = vld [vmem:[#allocation2 + $0x8] sm:$0xff] }
  0x94   :  { %958 = vmatprep.subr.bf16.mxu0 %v1317_v0  ;;  %960 = vmatprep.mubr.msk.bf16.mxu0 %vm1318_vm0, %v1317_v0  ;;  %v152_v3 = vpack.c.bf16 %v1512_v2, %v1510_v1  ;;  %v1516_v4 = vld [vmem:[#allocation5] sm:$0xff]   ;;  %v1053_v5 = vld [vmem:[#allocation7] sm:$0xff]   ;;  %vm158_vm1 = vcmask 130048   ;;  %v1054_v6 = vld [vmem:[#allocation7 + $0x8] sm:$0xff]   ;;  %vm219_vm2 = vcmask 261120   ;;  %s1319_s9 = smov 96  }
  0x95   :  { %964 = vmatprep.subr.bf16.mxu1 %v1317_v0  ;;  %968 = vmatprep.mubr.msk.bf16.mxu1 %vm1318_vm0, %v1317_v0  ;;  %v1055_v7 = vld [vmem:[#allocation8] sm:$0xff]   ;;  %v1056_v8 = vld [vmem:[#allocation8 + $0x8] sm:$0xff]   ;;  %v1059_v30 = vld [vmem:[#allocation7 + $0x10] sm:$0xff]   ;;  %s1320_s25 = smov [#allocation16]  }
  0x96   :  { %959 = vmatpush3.bf16.msra.mxu0 %v152_v3  ;;  %965 = vmatpush3.bf16.msra.mxu1 %v1053_v5  ;;  %v1057_v18 = vld [vmem:[#allocation10] sm:$0xff]   ;;  %v1058_v19 = vld [vmem:[#allocation10 + $0x8] sm:$0xff]   ;;  %v1060_v31 = vld [vmem:[#allocation7 + $0x18] sm:$0xff]   ;;  %s875_s23 = sshll.u32 %s1320_s25, 4  ;;  %s876_s23 = int_to_ptr.vmem [resolvable:$true] %s875_s23 }
  0x97   :  { %972 = vmatprep.subr.bf16.mxu0 %v1317_v0  ;;  %966 = vmatprep.subr.bf16.mxu1 %v1317_v0  ;;  %v899_v23 = vld [vmem:[%s1622_s4] ss:$0 sm:$0xff]  ;;  %v903_v34 = vld [vmem:[#allocation11] ss:$0 sm:$0xff]  ;;  %s1269_s24 = scalar_lea.vmem %s876_s23, 256  ;;  %p1274_p9 = scmp.lt.s32.totalorder %s876_s23, %s876_s23 }
  0x98   :  { %p1270_p8 = scmp.ne.s32.totalorder %s876_s23, %s1269_s24  ;;  %p1275_p10 = scmp.lt.s32.totalorder %s1269_s24, %s1269_s24 }
  0x99   :  { %961 = vmatmul.mubr.msk.bf16.vlgmr.msra.gmra.mrb[0].mxu0 %vm158_vm1, %v1516_v4 }
  0x9a   :  { %973 = vmatpush3.bf16.msra.mxu0 %v1055_v7  ;;  %976 = vmatprep.mubr.msk.bf16.mxu0 %vm1318_vm0, %v1317_v0  ;;  %p1276_p11 = por %p1275_p10, %p1274_p9 }
  0x9b   :  { %967 = vmatpush3.bf16.msra.mxu1 %v1054_v6  ;;  %974 = vmatprep.subr.bf16.mxu0 %v1317_v0 }
  0x9c   :  { %980 = vmatprep.subr.bf16.mxu1 %v1317_v0  ;;  %p1277_p12 = pnand %p1276_p11, %p1270_p8 }
  0x9e   :  { %969 = vmatmul.mubr.msk.bf16.vlgmr.msra.gmra.mrb[0].mxu1 %vm219_vm2, %v152_v3  ;;  %975 = vmatpush3.bf16.msra.mxu0 %v1056_v8 }
  0x9f   :  { %984 = vmatprep.mubr.msk.bf16.mxu1 %vm1318_vm0, %v1317_v0  ;;  %988 = vmatprep.subr.bf16.mxu0 %v1317_v0 }
  0xa0   :  { %981 = vmatpush3.bf16.msra.mxu1 %v1057_v18 }
  0xa1   :  { %982 = vmatprep.subr.bf16.mxu1 %v1317_v0 }
  0xa4   :  { %983 = vmatpush3.bf16.msra.mxu1 %v1058_v19 }
  0xa5   :  { %994 = vmatprep.subr.bf16.mxu1 %v1317_v0 }
 0x16c   :  { %v196_v9 = vpop.f32.mrb[0].mxu0 }
 0x16d   :  { %v962_v10 = vpop.f32.mrb[1].mxu0 }
 0x16e   :  { %v199_v11 = vpop.f32.mrb[2].mxu0 }
 0x16f   :  { %v264_v12 = vpack.c.bf16 %v199_v11, %v196_v9  ;;  %v963_v13 = vpop.f32.mrb[3].mxu0 }
 0x170   :  { %v1064_v13 = vld [vmem:[#allocation10 + $0x18] sm:$0xff]  }
 0x171   :  { %977 = vmatmul.mubr.msk.bf16.vlgmr.msra.gmra.mrb[4].mxu0 %vm219_vm2, %v264_v12  ;;  %v257_v14 = vpop.f32.mrb[0].mxu1  ;;  %v1063_v12 = vld [vmem:[#allocation10 + $0x10] sm:$0xff]  }
 0x172   :  { %990 = vmatprep.mubr.msk.bf16.mxu0 %vm1318_vm0, %v1317_v0  ;;  %355 = vrot.lane.b32.xlu0 %v257_v14, %s1319_s9  ;;  %v970_v15 = vpop.f32.mrb[1].mxu1 }
 0x173   :  { %v260_v16 = vpop.f32.mrb[2].mxu1 }
 0x174   :  { %v971_v17 = vpop.f32.mrb[3].mxu1 }
 0x175   :  { %v914_v17 = vld [vmem:[%s1622_s4 + $0x1] ss:$0 sm:$0xff] }
 0x176   :  { %357 = vrot.lane.b32.xlu0 %v260_v16, %s1319_s9 }
 0x1e4   :  { %v356_v32 = vpop.permute.xlu0 %355 }
 0x1e8   :  { %v358_v37 = vpop.permute.xlu0 %357 }
 0x244   :  { %v318_v20 = vpop.f32.mrb[4].mxu0 }
 0x245   :  { %v325_v21 = vadd.f32 %v318_v20, %v257_v14  ;;  %v978_v22 = vpop.f32.mrb[5].mxu0 }
 0x246   :  { %v321_v24 = vpop.f32.mrb[6].mxu0 }
 0x247   :  { %v326_v25 = vadd.f32 %v321_v24, %v260_v16  ;;  %v979_v26 = vpop.f32.mrb[7].mxu0  ;;  %v334_v27 = vadd.f32 %v899_v23, %v325_v21  ;;  %v1065_v24 = vld [vmem:[%s1625_s7] sm:$0xff]  }
 0x249   :  { %v335_v28 = vadd.f32 %v899_v23, %v326_v25  ;;  %v1066_v25 = vld [vmem:[%s1625_s7 + $0x8] sm:$0xff]  }
 0x24b   :  { %v336_v29 = vpack.c.bf16 %v335_v28, %v334_v27 }
 0x24d   :  { %985 = vmatmul.mubr.msk.bf16.vlgmr.msra.gmra.mrb[4].mxu1 %vm219_vm2, %v336_v29 }
 0x24e   :  { %998 = vmatprep.mubr.msk.bf16.mxu1 %vm1318_vm0, %v1317_v0  ;;  %995 = vmatpush3.bf16.msra.mxu1 %v1059_v30 }
 0x24f   :  { %996 = vmatprep.subr.bf16.mxu1 %v1317_v0 }
 0x252   :  { %997 = vmatpush3.bf16.msra.mxu1 %v1060_v31 }
 0x253   :  { %1010 = vmatprep.subr.bf16.mxu1 %v1317_v0 }
 0x320   :  { %v398_v33 = vpop.f32.mrb[4].mxu1 }
 0x321   :  { %v399_v35 = vadd.f32 %v398_v33, %v356_v32  ;;  %v986_v36 = vpop.f32.mrb[5].mxu1 }
 0x322   :  { %v401_v38 = vpop.f32.mrb[6].mxu1 }
 0x323   :  { %v412_v39 = vadd.f32 %v903_v34, %v399_v35  ;;  %v402_v40 = vadd.f32 %v401_v38, %v358_v37  ;;  %v987_v41 = vpop.f32.mrb[7].mxu1 }
 0x325   :  { %v904_v42 = vmul.f32 -1.442695, %v412_v39  ;;  %v413_v43 = vadd.f32 %v903_v34, %v402_v40 }
 0x327   :  { %1069 = vpow2.f32 %v904_v42  ;;  %v905_v44 = vmul.f32 -1.442695, %v413_v43 }
 0x329   :  { %1071 = vpow2.f32 %v905_v44 }
 0x32a   :  { %1073 = vtanh.f32 %v334_v27 }
 0x331   :  { %v1070_v45 = vpop.eup %1069 }
 0x332   :  { %v420_v46 = vadd.f32 1.0, %v1070_v45 }
 0x333   :  { %v1072_v47 = vpop.eup %1071 }
 0x334   :  { %1075 = vrcp.f32 %v420_v46  ;;  %v421_v48 = vadd.f32 1.0, %v1072_v47  ;;  %v1074_v49 = vpop.eup %1073 }
 0x335   :  { %1077 = vtanh.f32 %v335_v28  ;;  %v918_v28 = vld [vmem:[#allocation11 + $0x1] ss:$0 sm:$0xff] }
 0x336   :  { %1079 = vrcp.f32 %v421_v48 }
 0x33e   :  { %v1076_v50 = vpop.eup %1075 }
 0x33f   :  { %v1078_v51 = vpop.eup %1077  ;;  %v428_v52 = vmul.f32 %v1076_v50, %v1074_v49  ;;  %v430_v53 = vsub.f32 1.0, %v1076_v50 }
 0x340   :  { %v1080_v54 = vpop.eup %1079 }
 0x341   :  { %v429_v55 = vmul.f32 %v1080_v54, %v1078_v51  ;;  %v431_v56 = vsub.f32 1.0, %v1080_v54  ;;  %v432_v57 = vmul.f32 %v430_v53, %v1510_v1  ;;  %v1061_v1 = vld [vmem:[#allocation8 + $0x10] sm:$0xff]  }
 0x343   :  { %v433_v58 = vmul.f32 %v431_v56, %v1512_v2  ;;  %v1547_v59 = vadd.f32 %v432_v57, %v428_v52  ;;  %v1062_v2 = vld [vmem:[#allocation8 + $0x18] sm:$0xff]  }
 0x345   :  { %v1549_v60 = vadd.f32 %v433_v58, %v429_v55  ;;  %v436_v61 = vmax.f32 %v1547_v59, 0.0  ;;  %v1067_v58 = vld [vmem:[%s1628_s10] sm:$0xff]   ;;  %v1068_v59 = vld [vmem:[%s1628_s10 + $0x8] sm:$0xff]  }
 0x347   :  { %v437_v62 = vmax.f32 %v1549_v60, 0.0  ;;  %v921_v60 = vld [vmem:[#allocation13] ss:$0 sm:$0xff] }
 0x349   :  { %v438_v63 = vpack.c.bf16 %v437_v62, %v436_v61 }
 0x34b   :  { %989 = vmatpush3.bf16.msra.mxu0 %v438_v63  ;;  %999 = vmatmul.mubr.msk.bf16.vlgmr.msra.gmra.mrb[8].mxu1 %vm219_vm2, %v438_v63 }
 0x34c   :  { %1002 = vmatprep.subr.bf16.mxu0 %v1317_v0  ;;  %1014 = vmatprep.mubr.msk.bf16.mxu1 %vm1318_vm0, %v1317_v0 }
 0x34d   :  { %1011 = vmatpush3.bf16.msra.mxu1 %v1063_v12 }
 0x34e   :  { %991 = vmatmul.mubr.msk.bf16.vlgmr.msra.gmra.mrb[8].mxu0 %vm158_vm1, %v1516_v4  ;;  %1012 = vmatprep.subr.bf16.mxu1 %v1317_v0 }
 0x34f   :  { %1006 = vmatprep.mubr.msk.bf16.mxu0 %vm1318_vm0, %v1317_v0  ;;  %1003 = vmatpush3.bf16.msra.mxu0 %v1061_v1 }
 0x350   :  { %1004 = vmatprep.subr.bf16.mxu0 %v1317_v0 }
 0x351   :  { %1013 = vmatpush3.bf16.msra.mxu1 %v1064_v13 }
 0x352   :  { %1026 = vmatprep.subr.bf16.mxu1 %v1317_v0 }
 0x353   :  { %1005 = vmatpush3.bf16.msra.mxu0 %v1062_v2 }
 0x354   :  { %1018 = vmatprep.subr.bf16.mxu0 %v1317_v0 }
 0x41e   :  { %v534_v3 = vpop.f32.mrb[8].mxu1 }
 0x41f   :  { %635 = vrot.lane.b32.xlu1 %v534_v3, %s1319_s9  ;;  %v1000_v5 = vpop.f32.mrb[9].mxu1 }
 0x420   :  { %v537_v6 = vpop.f32.mrb[10].mxu1 }
 0x421   :  { %v473_v7 = vpop.f32.mrb[8].mxu0  ;;  %v1001_v8 = vpop.f32.mrb[11].mxu1 }
 0x422   :  { %v992_v9 = vpop.f32.mrb[9].mxu0 }
 0x423   :  { %637 = vrot.lane.b32.xlu1 %v537_v6, %s1319_s9  ;;  %v476_v4 = vpop.f32.mrb[10].mxu0 }
 0x424   :  { %v541_v10 = vpack.c.bf16 %v476_v4, %v473_v7  ;;  %v993_v11 = vpop.f32.mrb[11].mxu0  ;;  %v926_v4 = vld [vmem:[%s1629_s11] ss:$0 sm:$0xff] }
 0x426   :  { %1007 = vmatmul.mubr.msk.bf16.vlgmr.msra.gmra.mrb[12].mxu0 %vm219_vm2, %v541_v10 }
 0x427   :  { %1022 = vmatprep.mubr.msk.bf16.mxu0 %vm1318_vm0, %v1317_v0  ;;  %1019 = vmatpush3.bf16.msra.mxu0 %v1065_v24 }
 0x428   :  { %1020 = vmatprep.subr.bf16.mxu0 %v1317_v0 }
 0x42b   :  { %1021 = vmatpush3.bf16.msra.mxu0 %v1066_v25 }
 0x491   :  { %v636_v26 = vpop.permute.xlu1 %635 }
 0x495   :  { %v638_v31 = vpop.permute.xlu1 %637 }
 0x4f9   :  { %v596_v14 = vpop.f32.mrb[12].mxu0 }
 0x4fa   :  { %v603_v15 = vadd.f32 %v596_v14, %v534_v3  ;;  %v1008_v16 = vpop.f32.mrb[13].mxu0 }
 0x4fb   :  { %v599_v18 = vpop.f32.mrb[14].mxu0 }
 0x4fc   :  { %v604_v19 = vadd.f32 %v599_v18, %v537_v6  ;;  %v1009_v20 = vpop.f32.mrb[15].mxu0  ;;  %v613_v21 = vadd.f32 %v914_v17, %v603_v15 }
 0x4fe   :  { %v614_v22 = vadd.f32 %v914_v17, %v604_v19 }
 0x500   :  { %v615_v23 = vpack.c.bf16 %v614_v22, %v613_v21 }
 0x502   :  { %1015 = vmatmul.mubr.msk.bf16.vlgmr.msra.gmra.mrb[12].mxu1 %vm219_vm2, %v615_v23 }
 0x503   :  { %1030 = vmatprep.mubr.msk.bf16.mxu1 %vm1318_vm0, %v1317_v0  ;;  %1027 = vmatpush3.bf16.msra.mxu1 %v1067_v58 }
 0x504   :  { %1028 = vmatprep.subr.bf16.mxu1 %v1317_v0 }
 0x507   :  { %1029 = vmatpush3.bf16.msra.mxu1 %v1068_v59 }
 0x5d5   :  { %v678_v27 = vpop.f32.mrb[12].mxu1 }
 0x5d6   :  { %v679_v29 = vadd.f32 %v678_v27, %v636_v26  ;;  %v1016_v30 = vpop.f32.mrb[13].mxu1 }
 0x5d7   :  { %v681_v32 = vpop.f32.mrb[14].mxu1 }
 0x5d8   :  { %v693_v33 = vadd.f32 %v918_v28, %v679_v29  ;;  %v682_v34 = vadd.f32 %v681_v32, %v638_v31  ;;  %v1017_v35 = vpop.f32.mrb[15].mxu1 }
 0x5da   :  { %v919_v36 = vmul.f32 -1.442695, %v693_v33  ;;  %v694_v37 = vadd.f32 %v918_v28, %v682_v34 }
 0x5dc   :  { %1081 = vpow2.f32 %v919_v36  ;;  %v920_v38 = vmul.f32 -1.442695, %v694_v37 }
 0x5de   :  { %1083 = vpow2.f32 %v920_v38 }
 0x5df   :  { %1085 = vtanh.f32 %v613_v21 }
 0x5e6   :  { %v1082_v39 = vpop.eup %1081 }
 0x5e7   :  { %v701_v40 = vadd.f32 1.0, %v1082_v39 }
 0x5e8   :  { %v1084_v41 = vpop.eup %1083 }
 0x5e9   :  { %1087 = vrcp.f32 %v701_v40  ;;  %v702_v42 = vadd.f32 1.0, %v1084_v41  ;;  %v1086_v43 = vpop.eup %1085 }
 0x5ea   :  { %1089 = vtanh.f32 %v614_v22 }
 0x5eb   :  { %1091 = vrcp.f32 %v702_v42 }
 0x5f3   :  { %v1088_v44 = vpop.eup %1087 }
 0x5f4   :  { %v1090_v45 = vpop.eup %1089  ;;  %v711_v46 = vsub.f32 1.0, %v1088_v44  ;;  %v709_v47 = vmul.f32 %v1088_v44, %v1086_v43 }
 0x5f5   :  { %v1092_v48 = vpop.eup %1091 }
 0x5f6   :  { %v712_v49 = vsub.f32 1.0, %v1092_v48  ;;  %v710_v50 = vmul.f32 %v1092_v48, %v1090_v45  ;;  %v713_v51 = vmul.f32 %v711_v46, %v436_v61 }
 0x5f8   :  { %v714_v52 = vmul.f32 %v712_v49, %v437_v62  ;;  %v715_v53 = vadd.f32 %v713_v51, %v709_v47  ;;  %v925_v62 = vld [vmem:[#allocation14] ss:$0 sm:$0xff] }
 0x5fa   :  { %v716_v54 = vadd.f32 %v714_v52, %v710_v50  ;;  %v717_v55 = vmax.f32 %v715_v53, 0.0 }
 0x5fc   :  { %v718_v56 = vmax.f32 %v716_v54, 0.0 }
 0x5fe   :  { %v719_v57 = vpack.c.bf16 %v718_v56, %v717_v55 }
 0x600   :  { %1023 = vmatmul.mubr.msk.bf16.vlgmr.msra.gmra.mrb[16].mxu0 %vm219_vm2, %v719_v57 }
 0x6d3   :  { %v780_v61 = vpop.f32.mrb[16].mxu0 }
 0x6d4   :  { %v781_v63 = vadd.f32 %v921_v60, %v780_v61  ;;  %v1024_v1 = vpop.f32.mrb[17].mxu0 }
 0x6d5   :  { %v783_v2 = vpop.f32.mrb[18].mxu0 }
 0x6d6   :  { %v796_v3 = vmul.f32 %v925_v62, %v781_v63  ;;  %v784_v5 = vadd.f32 %v921_v60, %v783_v2  ;;  %v1025_v6 = vpop.f32.mrb[19].mxu0  ;;  %vm787_vm3 = vcmp.gt.f32.partialorder %v781_v63, 0.0 }
 0x6d8   :  { %vm788_vm4 = vcmp.gt.f32.partialorder %v784_v5, 0.0  ;;  %v797_v7 = vmul.f32 %v925_v62, %v784_v5  ;;  %v798_v8 = vsel %vm787_vm3, %v781_v63, %v796_v3 }
 0x6da   :  { %v799_v9 = vsel %vm788_vm4, %v784_v5, %v797_v7 }
 0x6db   :  { %v800_v0 = vpack.c.bf16 %v799_v9, %v798_v8 }
 0x6dd   :  { %1031 = vmatmul.mubr.msk.bf16.vlgmr.msra.gmra.mrb[16].mxu1 %vm219_vm2, %v800_v0 }
 0x7b0   :  { %v861_v10 = vpop.f32.mrb[16].mxu1 }
 0x7b1   :  { %v862_v11 = vadd.f32 %v926_v4, %v861_v10  ;;  %v1032_v12 = vpop.f32.mrb[17].mxu1 }
 0x7b2   :  { %v864_v13 = vpop.f32.mrb[18].mxu1 }
 0x7b3   :  { %868 = vst [vmem:[#allocation16] sm:$0xff] %v862_v11  ;;  %v865_v14 = vadd.f32 %v926_v4, %v864_v13  ;;  %v1033_v15 = vpop.f32.mrb[19].mxu1 }
 0x7b5   :  { %869 = vst [vmem:[#allocation16 + $0x8] sm:$0xff] %v865_v14 }
 0x7b6   :  { %1280 = shalt.err (!%p1277_p12)
}
 0x7b7   :  { %s1281_s26 = scalar_lea.hbm %s1630_s12, 256 }
 0x7b8   :  { %p1282_p13 = scmp.ne.s32.totalorder %s1630_s12, %s1281_s26  ;;  %p1285_p0 = scmp.lt.u32.totalorder %s1281_s26, %s1630_s12 }
 0x7ba   :  { %p1287_p1 = pnand %p1285_p0, %p1282_p13 }
 0x7bc   :  { %1290 = shalt.err (!%p1287_p1)
}
 0x7bd   :  { %881 = dma.vmem_to_hbm [thread:$0]  %s876_s23, 256, %s1630_s12, [#allocation4], %s1311_s6, %s1311_s6, %s1312_s20  }
 0x7be   :  { %1301 = dma.done.wait [#allocation4], 256  }
 0x7bf   :  { %1302 = vsyncadd [#allocation4], 4294967040 }
 0x7c0   :  { %885 = vsyncpa [#allocation3], 1 }
 0x7c1   :  { %886 = vsyncpa [#allocation6], 1 }
 0x7c2   :  { %887 = vsyncpa [#allocation9], 1 }
 0x7c3   :  { %888 = vsyncpa [#allocation12], 1 }
 0x7c4   :  { %889 = vsyncpa [#allocation15], 1 }
 0x7c5   :  { %890 = vsyncpa [#allocation4], 1 }

</bundles_post_ra>
